<compile_context>
chip_gen: v7x
topology: tpu7x:2x2x1
jax: 0.10.0
libtpu: 0.0.40
codegen_flags: <defaults>
</compile_context>

<pallas_src>
from typing import Sequence

import jax
import jax.numpy as jnp
import numpy as np
from jax.experimental import pallas as pl
from jax.experimental.pallas import tpu as pltpu

LANE = 128  # TPU lane width; all matmul N dims are padded to a multiple of it.


def _round_up(x, m):
    return (x + m - 1) // m * m


# ----------------------------------------------------------------------------
# Kernel
# ----------------------------------------------------------------------------
def _make_kernel(n_shared_layers: int, n_bypass_layers: int, compute_dtype):
    """Kernel closed over static layer counts and the MXU compute dtype."""

    def kernel(*refs):
        # Argument order:
        #   x_ref (block_b, n_features)                       [float32]
        #   shared params : Ws_0, bs_0, ..., Ws_{L-1}, bs_{L-1}   (lane-padded)
        #   bypass params : Wb_0, bb_0, ..., Wb_{M-1}, bb_{M-1}
        #                   (lane-packed over tasks; layer>=1 block-diagonal)
        #   Wo_shared_packed (Ls_p,        out_width_p)
        #   Wo_bypass_bd     (bp_last_p,   out_width_p)  block-diag, zero-padded
        #   bo_packed        (1,           out_width_p)
        #   out_ref          (block_b,     out_width_p)  [f32]
        idx = 0
        x_ref = refs[idx]; idx += 1
        shared_params = refs[idx: idx + 2 * n_shared_layers]
        idx += 2 * n_shared_layers
        bypass_params = refs[idx: idx + 2 * n_bypass_layers]
        idx += 2 * n_bypass_layers
        wos_ref = refs[idx]; idx += 1
        wob_ref = refs[idx]; idx += 1
        bo_ref = refs[idx]; idx += 1
        out_ref = refs[idx]

        x = x_ref[...]  # f32; cast to compute dtype at each dot (VPU, hidden)

        # ---- shared tower (ReLU each layer; dropout = identity in eval) ----
        h = x
        for i in range(n_shared_layers):
            w = shared_params[2 * i][...]
            b = shared_params[2 * i + 1][...]
            h = jnp.maximum(
                jnp.dot(h.astype(compute_dtype), w,
                        preferred_element_type=jnp.float32) + b, 0.0)

        # ---- all bypass towers at once (lane-packed over tasks) ----
        g = x
        for j in range(n_bypass_layers):
            w = bypass_params[2 * j][...]
            b = bypass_params[2 * j + 1][...]
            g = jnp.maximum(
                jnp.dot(g.astype(compute_dtype), w,
                        preferred_element_type=jnp.float32) + b, 0.0)

        # ---- fused output heads: one lane-dense slab for all tasks ----
        out_ref[...] = (
            jnp.dot(h.astype(compute_dtype), wos_ref[...],
                    preferred_element_type=jnp.float32)
            + jnp.dot(g.astype(compute_dtype), wob_ref[...],
                      preferred_element_type=jnp.float32)
            + bo_ref[...])

    return kernel


# ----------------------------------------------------------------------------
# Parameter init (module-shaped, unpacked) and lane-packing
# ----------------------------------------------------------------------------
def _trunc_normal(key, shape, std):
    # trunc_normal_ with |bound| = 2 and std = 0.02 never actually truncates.
    return jax.random.normal(key, shape, dtype=jnp.float32) * std


def init_params(key,
                n_tasks: int,
                n_features: int,
                layer_sizes: Sequence[int],
                bypass_layer_sizes: Sequence[int],
                n_classes: int,
                weight_init_stddev: float = 0.02,
                bias_init_const: float = 1.0,
                bypass_weight_init_stddev: float = 0.02,
                bypass_bias_init_const: float = 1.0):
    """Module-consistent parameter shapes (weights stored as torch_weight.T)."""
    n_keys = len(layer_sizes) + len(bypass_layer_sizes) + 2
    keys = iter(jax.random.split(key, n_keys))
    params = {}

    shared_w, shared_b = [], []
    prev = n_features
    for size in layer_sizes:
        shared_w.append(_trunc_normal(next(keys), (prev, size),
                                      weight_init_stddev))
        shared_b.append(jnp.full((1, size), bias_init_const, jnp.float32))
        prev = size
    params["shared_w"], params["shared_b"] = shared_w, shared_b

    bypass_w, bypass_b = [], []
    prev = n_features
    for size in bypass_layer_sizes:
        bypass_w.append(_trunc_normal(next(keys), (n_tasks, prev, size),
                                      bypass_weight_init_stddev))
        bypass_b.append(jnp.full((n_tasks, 1, size), bypass_bias_init_const,
                                 jnp.float32))
        prev = size
    params["bypass_w"], params["bypass_b"] = bypass_w, bypass_b

    params["wo_shared"] = _trunc_normal(
        next(keys), (n_tasks, layer_sizes[-1], n_classes), weight_init_stddev)
    params["wo_bypass"] = _trunc_normal(
        next(keys), (n_tasks, bypass_layer_sizes[-1], n_classes),
        weight_init_stddev)
    params["bo"] = jnp.zeros((n_tasks, 1, n_classes), jnp.float32)
    return params


def _pad2(a, rows, cols):
    return jnp.pad(a, ((0, rows - a.shape[0]), (0, cols - a.shape[1])))


def pack_params(params, *, n_tasks, n_classes, compute_dtype=jnp.bfloat16):
    """Lane-pack per-task parameters for the fused kernel (done once).

    All matmul output (lane) widths are zero-padded to multiples of 128 so the
    MXU runs full columns and the final store is lane-dense.  Padded bias
    lanes are zero and padded weight rows/cols are zero everywhere, so the
    padded lanes stay exactly zero through every ReLU (no leakage into real
    task outputs).
    """
    packed = {}

    # ---- shared tower ----
    shared = []
    prev_p = params["shared_w"][0].shape[0]  # n_features (K of layer 0 == x)
    for w, b in zip(params["shared_w"], params["shared_b"]):
        size = w.shape[1]
        size_p = _round_up(size, LANE)
        wp = _pad2(w, prev_p, size_p)
        bp = _pad2(b, 1, size_p)
        shared.append((wp.astype(compute_dtype), bp.astype(jnp.float32)))
        prev_p = size_p
    packed["shared"] = shared
    shared_out_p = prev_p

    # ---- bypass towers (lane-packed over tasks; layer>=1 block-diagonal) ----
    # TODO(synk): block-diagonal packing is O(n_tasks^2) in VMEM/FLOPs; for
    # large n_tasks stream per-task weights via a task grid axis instead.
    bypass = []
    prev_p = params["bypass_w"][0].shape[1]  # n_features
    for j, (w, b) in enumerate(zip(params["bypass_w"], params["bypass_b"])):
        n_t, prev, size = w.shape
        width = n_t * size
        width_p = _round_up(width, LANE)
        if j == 0:
            # x is shared across tasks -> pack output lanes task-major.
            wp = jnp.transpose(w, (1, 0, 2)).reshape(prev, width)
        else:
            # deeper layers only mix within a task -> block diagonal.
            wp = jax.scipy.linalg.block_diag(*[w[t] for t in range(n_t)])
        wp = _pad2(wp, prev_p, width_p)
        bp = _pad2(b.reshape(1, width), 1, width_p)
        bypass.append((wp.astype(compute_dtype), bp.astype(jnp.float32)))
        prev_p = width_p
    packed["bypass"] = bypass
    bypass_out_p = prev_p

    # ---- fused output heads ----
    out_width = n_tasks * n_classes
    out_width_p = _round_up(out_width, LANE)

    wos = params["wo_shared"]   # (n_tasks, Ls, C) -> (Ls_p, out_width_p)
    wos_packed = jnp.transpose(wos, (1, 0, 2)).reshape(wos.shape[1], out_width)
    packed["wo_shared"] = _pad2(wos_packed, shared_out_p,
                                out_width_p).astype(compute_dtype)

    wob = params["wo_bypass"]   # (n_tasks, bl, C) -> block-diag, zero-padded
    wob_bd = jax.scipy.linalg.block_diag(*[wob[t] for t in range(n_tasks)])
    packed["wo_bypass"] = _pad2(wob_bd, bypass_out_p,
                                out_width_p).astype(compute_dtype)

    packed["bo"] = _pad2(params["bo"].reshape(1, out_width), 1,
                         out_width_p).astype(jnp.float32)
    packed["out_width"] = out_width
    return packed


# ----------------------------------------------------------------------------
# Forward pass
# ----------------------------------------------------------------------------
def robust_multitask_forward(x, packed, *, n_tasks, n_classes,
                             mode: str = "regression",
                             compute_dtype=jnp.bfloat16,
                             single_buffer_weights: bool = True):
    """Pallas forward.  regression -> (B, n_tasks, n_classes); classification
    -> (proba, logits)."""
    batch, n_features = x.shape
    n_shared = len(packed["shared"])
    n_bypass = len(packed["bypass"])
    out_width = n_tasks * n_classes
    out_width_p = packed["bo"].shape[1]

    # ---- generation-aware tile / VMEM sizing ----
    try:
        vmem_cap = int(pltpu.get_tpu_info().vmem_capacity_bytes)
    except Exception:
        vmem_cap = 128 * 1024 * 1024
    small_vmem = vmem_cap <= 64 * 1024 * 1024          # v7x-class (64 MiB / TC)
    max_tile = 256 if small_vmem else 512              # v5e/v6e: 128 MiB -> 512
    vmem_request = 48 * 1024 * 1024 if small_vmem else 100 * 1024 * 1024
    vmem_request = max(32 * 1024 * 1024,
                       min(vmem_request, vmem_cap - 16 * 1024 * 1024))

    # Batch tiling.  The batch axis is "parallel"; for moderate batches force
    # >= 2 grid steps so both TensorCores are used on v7x.  No wrapper-side
    # padding: pl.cdiv + Pallas edge-block masking handles ragged batches.
    if batch < 16:
        block_b = batch                      # single block == full array dim
    elif batch < 2 * max_tile:
        block_b = _round_up(pl.cdiv(batch, 2), 8)
    else:
        block_b = max_tile
    grid = (pl.cdiv(batch, block_b),)

    # x stays float32 in HBM; the bf16 cast happens on the VPU in-kernel.
    inputs = [x]
    for w, b in packed["shared"]:
        inputs += [w, b]
    for w, b in packed["bypass"]:
        inputs += [w, b]
    inputs += [packed["wo_shared"], packed["wo_bypass"], packed["bo"]]

    def build_specs(single_buffer):
        def weight_spec(a):
            # Constant block index -> weight stays VMEM-resident; request a
            # single buffer to halve the resident footprint.
            if single_buffer:
                return pl.BlockSpec(a.shape, lambda i: (0, 0),
                                    pipeline_mode=pl.Buffered(1))
            return pl.BlockSpec(a.shape, lambda i: (0, 0))

        in_specs = [pl.BlockSpec((block_b, n_features), lambda i: (i, 0))]
        in_specs += [weight_spec(a) for a in inputs[1:]]
        out_spec = pl.BlockSpec((block_b, out_width_p), lambda i: (i, 0))
        return in_specs, out_spec

    # Advisory cost estimate (helps XLA schedule the glue around the call).
    flops = 0
    for a in inputs[1:]:
        if a.ndim == 2 and a.shape[0] > 1:          # weights, not biases
            flops += 2 * batch * a.shape[0] * a.shape[1]
    bytes_accessed = int(
        int(x.size) * x.dtype.itemsize
        + sum(int(a.size) * a.dtype.itemsize for a in inputs[1:])
        + batch * out_width_p * 4)

    kernel = _make_kernel(n_shared, n_bypass, compute_dtype)

    def run(single_buffer):
        in_specs, out_spec = build_specs(single_buffer)
        return pl.pallas_call(
            kernel,
            out_shape=jax.ShapeDtypeStruct((batch, out_width_p), jnp.float32),
            grid=grid,
            in_specs=in_specs,
            out_specs=out_spec,
            compiler_params=pltpu.CompilerParams(
                dimension_semantics=("parallel",),
                vmem_limit_bytes=int(vmem_request)),
            cost_estimate=pl.CostEstimate(flops=flops, transcendentals=0,
                                          bytes_accessed=bytes_accessed),
        )(*inputs)

    if single_buffer_weights:
        try:
            out = run(True)
        except Exception:
            # Fallback if this jax build rejects pl.Buffered(1) for inputs.
            out = run(False)
    else:
        out = run(False)

    # Lane-dense padded slab -> PyTorch layout: slice off lane pad + reshape
    # (task-major packing makes the reshape free; no transpose needed).
    output = out[:, :out_width].reshape(batch, n_tasks, n_classes)

    if mode == "classification":
        if n_tasks == 1:
            logits = output.reshape(-1, n_classes)
            proba = jax.nn.softmax(logits, axis=1)
        else:
            logits = output.reshape(-1, n_tasks, n_classes)
            proba = jax.nn.softmax(logits, axis=2)
        return proba, logits
    return output


# ----------------------------------------------------------------------------
# Pure-JAX reference (f32, unpacked params) for correctness
# ----------------------------------------------------------------------------
def _reference_forward(x, params, *, n_tasks):
    h = x
    for w, b in zip(params["shared_w"], params["shared_b"]):
        h = jnp.maximum(h @ w + b, 0.0)
    outs = []
    for t in range(n_tasks):
        g = x
        for w, b in zip(params["bypass_w"], params["bypass_b"]):
            g = jnp.maximum(g @ w[t] + b[t], 0.0)
        outs.append(h @ params["wo_shared"][t] + g @ params["wo_bypass"][t]
                    + params["bo"][t])
    return jnp.stack(outs, axis=1)


if __name__ == "__main__":
    # Small, module-consistent shapes.
    batch = 8
    n_tasks = 3
    n_features = 32
    layer_sizes = [64]
    bypass_layer_sizes = [32]
    n_classes = 2

    key = jax.random.PRNGKey(0)
    kx, kp = jax.random.split(key)
    x = jax.random.normal(kx, (batch, n_features), dtype=jnp.float32)
    params = init_params(kp, n_tasks, n_features, layer_sizes,
                         bypass_layer_sizes, n_classes)
    packed = pack_params(params, n_tasks=n_tasks, n_classes=n_classes,
                         compute_dtype=jnp.bfloat16)

    out = robust_multitask_forward(x, packed, n_tasks=n_tasks,
                                   n_classes=n_classes, mode="regression",
                                   compute_dtype=jnp.bfloat16)
    out = jax.block_until_ready(out)

    ref = _reference_forward(x, params, n_tasks=n_tasks)
    # bf16 weights/activations with f32 accumulation -> loosened tolerance
    # vs the f32 PyTorch reference (acceptable for inference).
    np.testing.assert_allclose(np.asarray(out), np.asarray(ref),
                               rtol=3e-2, atol=3e-2)
    assert out.shape == (batch, n_tasks, n_classes)

    # TODO(synk): dropout layers are eval-mode identity (inference forward).
    print("KERNEL_OK")
</pallas_src>

<mosaic_0001>
module attributes {stable_mosaic.version = 11 : i64} {
  func.func @kernel(%arg0: i32, %arg1: memref<8x32xf32, #tpu.memory_space<vmem>>, %arg2: memref<32x128xbf16, #tpu.memory_space<vmem>>, %arg3: memref<1x128xf32, #tpu.memory_space<vmem>>, %arg4: memref<32x128xbf16, #tpu.memory_space<vmem>>, %arg5: memref<1x128xf32, #tpu.memory_space<vmem>>, %arg6: memref<128x128xbf16, #tpu.memory_space<vmem>>, %arg7: memref<128x128xbf16, #tpu.memory_space<vmem>>, %arg8: memref<1x128xf32, #tpu.memory_space<vmem>>, %arg9: memref<8x128xf32, #tpu.memory_space<vmem>>) attributes {dimension_semantics = [#tpu.dimension_semantics<parallel>], iteration_bounds = array<i64: 1>, scalar_prefetch = 0 : i64, scratch_operands = 0 : i64, tpu.core_type = #tpu.core_type<tc>, window_params = [{transform_indices = @transform_0, window_bounds = array<i64: 8, 32>}, {pipeline_mode = #tpu.pipeline_mode<synchronous>, transform_indices = @transform_1, window_bounds = array<i64: 32, 128>}, {pipeline_mode = #tpu.pipeline_mode<synchronous>, transform_indices = @transform_2, window_bounds = array<i64: 1, 128>}, {pipeline_mode = #tpu.pipeline_mode<synchronous>, transform_indices = @transform_3, window_bounds = array<i64: 32, 128>}, {pipeline_mode = #tpu.pipeline_mode<synchronous>, transform_indices = @transform_4, window_bounds = array<i64: 1, 128>}, {pipeline_mode = #tpu.pipeline_mode<synchronous>, transform_indices = @transform_5, window_bounds = array<i64: 128, 128>}, {pipeline_mode = #tpu.pipeline_mode<synchronous>, transform_indices = @transform_6, window_bounds = array<i64: 128, 128>}, {pipeline_mode = #tpu.pipeline_mode<synchronous>, transform_indices = @transform_7, window_bounds = array<i64: 1, 128>}, {transform_indices = @transform_8, window_bounds = array<i64: 8, 128>}]} {
    %c0 = arith.constant 0 : index
    %c0_0 = arith.constant 0 : index
    %0 = vector.load %arg1[%c0, %c0_0] : memref<8x32xf32, #tpu.memory_space<vmem>>, vector<8x32xf32>
    %c0_1 = arith.constant 0 : index
    %c0_2 = arith.constant 0 : index
    %1 = vector.load %arg2[%c0_1, %c0_2] : memref<32x128xbf16, #tpu.memory_space<vmem>>, vector<32x128xbf16>
    %c0_3 = arith.constant 0 : index
    %c0_4 = arith.constant 0 : index
    %2 = vector.load %arg3[%c0_3, %c0_4] : memref<1x128xf32, #tpu.memory_space<vmem>>, vector<1x128xf32>
    %3 = arith.truncf %0 : vector<8x32xf32> to vector<8x32xbf16>
    %cst = arith.constant dense<0.000000e+00> : vector<8x128xf32>
    %4 = tpu.matmul %3, %1, %cst {dimension_numbers = #tpu.dot_dimension_numbers<[1], [0], [0], [1], [0, 0, 1, 1], [], []>} : vector<8x32xbf16>, vector<32x128xbf16>, vector<8x128xf32> -> vector<8x128xf32>
    %5 = vector.broadcast %2 : vector<1x128xf32> to vector<8x128xf32>
    %6 = arith.addf %4, %5 : vector<8x128xf32>
    %cst_5 = arith.constant 0.000000e+00 : f32
    %7 = vector.broadcast %cst_5 : f32 to vector<8x128xf32>
    %8 = arith.maximumf %6, %7 : vector<8x128xf32>
    %c0_6 = arith.constant 0 : index
    %c0_7 = arith.constant 0 : index
    %9 = vector.load %arg4[%c0_6, %c0_7] : memref<32x128xbf16, #tpu.memory_space<vmem>>, vector<32x128xbf16>
    %c0_8 = arith.constant 0 : index
    %c0_9 = arith.constant 0 : index
    %10 = vector.load %arg5[%c0_8, %c0_9] : memref<1x128xf32, #tpu.memory_space<vmem>>, vector<1x128xf32>
    %11 = arith.truncf %0 : vector<8x32xf32> to vector<8x32xbf16>
    %cst_10 = arith.constant dense<0.000000e+00> : vector<8x128xf32>
    %12 = tpu.matmul %11, %9, %cst_10 {dimension_numbers = #tpu.dot_dimension_numbers<[1], [0], [0], [1], [0, 0, 1, 1], [], []>} : vector<8x32xbf16>, vector<32x128xbf16>, vector<8x128xf32> -> vector<8x128xf32>
    %13 = vector.broadcast %10 : vector<1x128xf32> to vector<8x128xf32>
    %14 = arith.addf %12, %13 : vector<8x128xf32>
    %cst_11 = arith.constant 0.000000e+00 : f32
    %15 = vector.broadcast %cst_11 : f32 to vector<8x128xf32>
    %16 = arith.maximumf %14, %15 : vector<8x128xf32>
    %17 = arith.truncf %8 : vector<8x128xf32> to vector<8x128xbf16>
    %c0_12 = arith.constant 0 : index
    %c0_13 = arith.constant 0 : index
    %18 = vector.load %arg6[%c0_12, %c0_13] : memref<128x128xbf16, #tpu.memory_space<vmem>>, vector<128x128xbf16>
    %cst_14 = arith.constant dense<0.000000e+00> : vector<8x128xf32>
    %19 = tpu.matmul %17, %18, %cst_14 {dimension_numbers = #tpu.dot_dimension_numbers<[1], [0], [0], [1], [0, 0, 1, 1], [], []>} : vector<8x128xbf16>, vector<128x128xbf16>, vector<8x128xf32> -> vector<8x128xf32>
    %20 = arith.truncf %16 : vector<8x128xf32> to vector<8x128xbf16>
    %c0_15 = arith.constant 0 : index
    %c0_16 = arith.constant 0 : index
    %21 = vector.load %arg7[%c0_15, %c0_16] : memref<128x128xbf16, #tpu.memory_space<vmem>>, vector<128x128xbf16>
    %cst_17 = arith.constant dense<0.000000e+00> : vector<8x128xf32>
    %22 = tpu.matmul %20, %21, %cst_17 {dimension_numbers = #tpu.dot_dimension_numbers<[1], [0], [0], [1], [0, 0, 1, 1], [], []>} : vector<8x128xbf16>, vector<128x128xbf16>, vector<8x128xf32> -> vector<8x128xf32>
    %23 = arith.addf %19, %22 : vector<8x128xf32>
    %c0_18 = arith.constant 0 : index
    %c0_19 = arith.constant 0 : index
    %24 = vector.load %arg8[%c0_18, %c0_19] : memref<1x128xf32, #tpu.memory_space<vmem>>, vector<1x128xf32>
    %25 = vector.broadcast %24 : vector<1x128xf32> to vector<8x128xf32>
    %26 = arith.addf %23, %25 : vector<8x128xf32>
    %c0_20 = arith.constant 0 : index
    %c0_21 = arith.constant 0 : index
    %27 = vector.load %arg9[%c0_20, %c0_21] : memref<8x128xf32, #tpu.memory_space<vmem>>, vector<8x128xf32>
    tpu.vector_store %arg9[%c0_20, %c0_21], %26 {strides = array<i32>} : memref<8x128xf32, #tpu.memory_space<vmem>>, vector<8x128xf32>,
    return
  }
  func.func @transform_0(%arg0: i32) -> (i32, i32) {
    %c0_i32 = arith.constant 0 : i32
    %c0_i32_0 = arith.constant 0 : i32
    return %arg0, %c0_i32 : i32, i32
  }
  func.func @transform_1(%arg0: i32) -> (i32, i32) {
    %c0_i32 = arith.constant 0 : i32
    %c0_i32_0 = arith.constant 0 : i32
    %c0_i32_1 = arith.constant 0 : i32
    return %c0_i32, %c0_i32_0 : i32, i32
  }
  func.func @transform_2(%arg0: i32) -> (i32, i32) {
    %c0_i32 = arith.constant 0 : i32
    %c0_i32_0 = arith.constant 0 : i32
    %c0_i32_1 = arith.constant 0 : i32
    return %c0_i32, %c0_i32_0 : i32, i32
  }
  func.func @transform_3(%arg0: i32) -> (i32, i32) {
    %c0_i32 = arith.constant 0 : i32
    %c0_i32_0 = arith.constant 0 : i32
    %c0_i32_1 = arith.constant 0 : i32
    return %c0_i32, %c0_i32_0 : i32, i32
  }
  func.func @transform_4(%arg0: i32) -> (i32, i32) {
    %c0_i32 = arith.constant 0 : i32
    %c0_i32_0 = arith.constant 0 : i32
    %c0_i32_1 = arith.constant 0 : i32
    return %c0_i32, %c0_i32_0 : i32, i32
  }
  func.func @transform_5(%arg0: i32) -> (i32, i32) {
    %c0_i32 = arith.constant 0 : i32
    %c0_i32_0 = arith.constant 0 : i32
    %c0_i32_1 = arith.constant 0 : i32
    return %c0_i32, %c0_i32_0 : i32, i32
  }
  func.func @transform_6(%arg0: i32) -> (i32, i32) {
    %c0_i32 = arith.constant 0 : i32
    %c0_i32_0 = arith.constant 0 : i32
    %c0_i32_1 = arith.constant 0 : i32
    return %c0_i32, %c0_i32_0 : i32, i32
  }
  func.func @transform_7(%arg0: i32) -> (i32, i32) {
    %c0_i32 = arith.constant 0 : i32
    %c0_i32_0 = arith.constant 0 : i32
    %c0_i32_1 = arith.constant 0 : i32
    return %c0_i32, %c0_i32_0 : i32, i32
  }
  func.func @transform_8(%arg0: i32) -> (i32, i32) {
    %c0_i32 = arith.constant 0 : i32
    %c0_i32_0 = arith.constant 0 : i32
    return %arg0, %c0_i32 : i32, i32
  }
}

module attributes {stable_mosaic.version = 11 : i64} {
  func.func @kernel(%arg0: i32, %arg1: memref<8x32xf32, #tpu.memory_space<vmem>>, %arg2: memref<32x128xbf16, #tpu.memory_space<vmem>>, %arg3: memref<1x128xf32, #tpu.memory_space<vmem>>, %arg4: memref<32x128xbf16, #tpu.memory_space<vmem>>, %arg5: memref<1x128xf32, #tpu.memory_space<vmem>>, %arg6: memref<128x128xbf16, #tpu.memory_space<vmem>>, %arg7: memref<128x128xbf16, #tpu.memory_space<vmem>>, %arg8: memref<1x128xf32, #tpu.memory_space<vmem>>, %arg9: memref<8x128xf32, #tpu.memory_space<vmem>>) attributes {dimension_semantics = [#tpu.dimension_semantics<parallel>], iteration_bounds = array<i64: 1>, scalar_prefetch = 0 : i64, scratch_operands = 0 : i64, tpu.core_type = #tpu.core_type<tc>, window_params = [{transform_indices = @transform_0, window_bounds = array<i64: 8, 32>}, {pipeline_mode = #tpu.pipeline_mode<synchronous>, transform_indices = @transform_1, window_bounds = array<i64: 32, 128>}, {pipeline_mode = #tpu.pipeline_mode<synchronous>, transform_indices = @transform_2, window_bounds = array<i64: 1, 128>}, {pipeline_mode = #tpu.pipeline_mode<synchronous>, transform_indices = @transform_3, window_bounds = array<i64: 32, 128>}, {pipeline_mode = #tpu.pipeline_mode<synchronous>, transform_indices = @transform_4, window_bounds = array<i64: 1, 128>}, {pipeline_mode = #tpu.pipeline_mode<synchronous>, transform_indices = @transform_5, window_bounds = array<i64: 128, 128>}, {pipeline_mode = #tpu.pipeline_mode<synchronous>, transform_indices = @transform_6, window_bounds = array<i64: 128, 128>}, {pipeline_mode = #tpu.pipeline_mode<synchronous>, transform_indices = @transform_7, window_bounds = array<i64: 1, 128>}, {transform_indices = @transform_8, window_bounds = array<i64: 8, 128>}]} {
    %c0 = arith.constant 0 : index
    %c0_0 = arith.constant 0 : index
    %0 = vector.load %arg1[%c0, %c0_0] : memref<8x32xf32, #tpu.memory_space<vmem>>, vector<8x32xf32>
    %c0_1 = arith.constant 0 : index
    %c0_2 = arith.constant 0 : index
    %1 = vector.load %arg2[%c0_1, %c0_2] : memref<32x128xbf16, #tpu.memory_space<vmem>>, vector<32x128xbf16>
    %c0_3 = arith.constant 0 : index
    %c0_4 = arith.constant 0 : index
    %2 = vector.load %arg3[%c0_3, %c0_4] : memref<1x128xf32, #tpu.memory_space<vmem>>, vector<1x128xf32>
    %3 = arith.truncf %0 : vector<8x32xf32> to vector<8x32xbf16>
    %cst = arith.constant dense<0.000000e+00> : vector<8x128xf32>
    %4 = tpu.matmul %3, %1, %cst {dimension_numbers = #tpu.dot_dimension_numbers<[1], [0], [0], [1], [0, 0, 1, 1], [], []>} : vector<8x32xbf16>, vector<32x128xbf16>, vector<8x128xf32> -> vector<8x128xf32>
    %5 = vector.broadcast %2 : vector<1x128xf32> to vector<8x128xf32>
    %6 = arith.addf %4, %5 : vector<8x128xf32>
    %cst_5 = arith.constant 0.000000e+00 : f32
    %7 = vector.broadcast %cst_5 : f32 to vector<8x128xf32>
    %8 = arith.maximumf %6, %7 : vector<8x128xf32>
    %c0_6 = arith.constant 0 : index
    %c0_7 = arith.constant 0 : index
    %9 = vector.load %arg4[%c0_6, %c0_7] : memref<32x128xbf16, #tpu.memory_space<vmem>>, vector<32x128xbf16>
    %c0_8 = arith.constant 0 : index
    %c0_9 = arith.constant 0 : index
    %10 = vector.load %arg5[%c0_8, %c0_9] : memref<1x128xf32, #tpu.memory_space<vmem>>, vector<1x128xf32>
    %11 = arith.truncf %0 : vector<8x32xf32> to vector<8x32xbf16>
    %cst_10 = arith.constant dense<0.000000e+00> : vector<8x128xf32>
    %12 = tpu.matmul %11, %9, %cst_10 {dimension_numbers = #tpu.dot_dimension_numbers<[1], [0], [0], [1], [0, 0, 1, 1], [], []>} : vector<8x32xbf16>, vector<32x128xbf16>, vector<8x128xf32> -> vector<8x128xf32>
    %13 = vector.broadcast %10 : vector<1x128xf32> to vector<8x128xf32>
    %14 = arith.addf %12, %13 : vector<8x128xf32>
    %cst_11 = arith.constant 0.000000e+00 : f32
    %15 = vector.broadcast %cst_11 : f32 to vector<8x128xf32>
    %16 = arith.maximumf %14, %15 : vector<8x128xf32>
    %17 = arith.truncf %8 : vector<8x128xf32> to vector<8x128xbf16>
    %c0_12 = arith.constant 0 : index
    %c0_13 = arith.constant 0 : index
    %18 = vector.load %arg6[%c0_12, %c0_13] : memref<128x128xbf16, #tpu.memory_space<vmem>>, vector<128x128xbf16>
    %cst_14 = arith.constant dense<0.000000e+00> : vector<8x128xf32>
    %19 = tpu.matmul %17, %18, %cst_14 {dimension_numbers = #tpu.dot_dimension_numbers<[1], [0], [0], [1], [0, 0, 1, 1], [], []>} : vector<8x128xbf16>, vector<128x128xbf16>, vector<8x128xf32> -> vector<8x128xf32>
    %20 = arith.truncf %16 : vector<8x128xf32> to vector<8x128xbf16>
    %c0_15 = arith.constant 0 : index
    %c0_16 = arith.constant 0 : index
    %21 = vector.load %arg7[%c0_15, %c0_16] : memref<128x128xbf16, #tpu.memory_space<vmem>>, vector<128x128xbf16>
    %cst_17 = arith.constant dense<0.000000e+00> : vector<8x128xf32>
    %22 = tpu.matmul %20, %21, %cst_17 {dimension_numbers = #tpu.dot_dimension_numbers<[1], [0], [0], [1], [0, 0, 1, 1], [], []>} : vector<8x128xbf16>, vector<128x128xbf16>, vector<8x128xf32> -> vector<8x128xf32>
    %23 = arith.addf %19, %22 : vector<8x128xf32>
    %c0_18 = arith.constant 0 : index
    %c0_19 = arith.constant 0 : index
    %24 = vector.load %arg8[%c0_18, %c0_19] : memref<1x128xf32, #tpu.memory_space<vmem>>, vector<1x128xf32>
    %25 = vector.broadcast %24 : vector<1x128xf32> to vector<8x128xf32>
    %26 = arith.addf %23, %25 : vector<8x128xf32>
    %c0_20 = arith.constant 0 : index
    %c0_21 = arith.constant 0 : index
    %27 = vector.load %arg9[%c0_20, %c0_21] : memref<8x128xf32, #tpu.memory_space<vmem>>, vector<8x128xf32>
    tpu.vector_store %arg9[%c0_20, %c0_21], %26 {strides = array<i32>} : memref<8x128xf32, #tpu.memory_space<vmem>>, vector<8x128xf32>,
    return
  }
  func.func @transform_0(%arg0: i32) -> (i32, i32) {
    %c0_i32 = arith.constant 0 : i32
    %c0_i32_0 = arith.constant 0 : i32
    return %arg0, %c0_i32 : i32, i32
  }
  func.func @transform_1(%arg0: i32) -> (i32, i32) {
    %c0_i32 = arith.constant 0 : i32
    %c0_i32_0 = arith.constant 0 : i32
    %c0_i32_1 = arith.constant 0 : i32
    return %c0_i32, %c0_i32_0 : i32, i32
  }
  func.func @transform_2(%arg0: i32) -> (i32, i32) {
    %c0_i32 = arith.constant 0 : i32
    %c0_i32_0 = arith.constant 0 : i32
    %c0_i32_1 = arith.constant 0 : i32
    return %c0_i32, %c0_i32_0 : i32, i32
  }
  func.func @transform_3(%arg0: i32) -> (i32, i32) {
    %c0_i32 = arith.constant 0 : i32
    %c0_i32_0 = arith.constant 0 : i32
    %c0_i32_1 = arith.constant 0 : i32
    return %c0_i32, %c0_i32_0 : i32, i32
  }
  func.func @transform_4(%arg0: i32) -> (i32, i32) {
    %c0_i32 = arith.constant 0 : i32
    %c0_i32_0 = arith.constant 0 : i32
    %c0_i32_1 = arith.constant 0 : i32
    return %c0_i32, %c0_i32_0 : i32, i32
  }
  func.func @transform_5(%arg0: i32) -> (i32, i32) {
    %c0_i32 = arith.constant 0 : i32
    %c0_i32_0 = arith.constant 0 : i32
    %c0_i32_1 = arith.constant 0 : i32
    return %c0_i32, %c0_i32_0 : i32, i32
  }
  func.func @transform_6(%arg0: i32) -> (i32, i32) {
    %c0_i32 = arith.constant 0 : i32
    %c0_i32_0 = arith.constant 0 : i32
    %c0_i32_1 = arith.constant 0 : i32
    return %c0_i32, %c0_i32_0 : i32, i32
  }
  func.func @transform_7(%arg0: i32) -> (i32, i32) {
    %c0_i32 = arith.constant 0 : i32
    %c0_i32_0 = arith.constant 0 : i32
    %c0_i32_1 = arith.constant 0 : i32
    return %c0_i32, %c0_i32_0 : i32, i32
  }
  func.func @transform_8(%arg0: i32) -> (i32, i32) {
    %c0_i32 = arith.constant 0 : i32
    %c0_i32_0 = arith.constant 0 : i32
    return %arg0, %c0_i32 : i32, i32
  }
}

</mosaic_0001>

<bundles_post_ra>
// kernel: tpu_custom_call.1
= control target key start
LH: loop header
LB: loop body
LE: loop exit
PB: predicated region body
PF: predicated region fallthrough
CT: control target
= control target key end

     0   :  { %13 = vsyncpa [#allocation3], 0  ;;  %s1058_s0 = inlined_call_operand.hbm [shape: f32[8,32], index: 0, kind: input, shape index: {}]   ;;  %s1059_s1 = inlined_call_operand.hbm [shape: bf16[32,128], index: 1, kind: input, shape index: {}]   ;;  %s1060_s2 = inlined_call_operand.hbm [shape: f32[1,128], index: 2, kind: input, shape index: {}]   ;;  %s1061_s3 = inlined_call_operand.hbm [shape: bf16[32,128], index: 3, kind: input, shape index: {}]   ;;  %s1062_s4 = inlined_call_operand.hbm [shape: f32[1,128], index: 4, kind: input, shape index: {}]   ;;  %s1063_s5 = inlined_call_operand.hbm [shape: bf16[128,128], index: 5, kind: input, shape index: {}]   ;;  %s1064_s6 = inlined_call_operand.hbm [shape: bf16[128,128], index: 6, kind: input, shape index: {}]   ;;  %s1065_s7 = inlined_call_operand.hbm [shape: f32[1,128], index: 7, kind: input, shape index: {}]   ;;  %s1066_s8 = inlined_call_operand.hbm [shape: f32[8,128], index: 8, kind: output, shape index: {}]  }
   0x1   :  { %14 = vsyncpa [#allocation6], 0 }
   0x2   :  { %15 = vsyncpa [#allocation9], 0 }
   0x3   :  { %16 = vsyncpa [#allocation12], 0 }
   0x4   :  { %17 = vsyncpa [#allocation15], 0 }
   0x5   :  { %18 = vsyncpa [#allocation4], 0  ;;  %s852_s27 = smov [#allocation5]   ;;  %s642_s9 = scalar_lea.hbm %s1059_s1, 256 }
   0x6   :  { %s34_s28 = sshll.u32 %s852_s27, 4  ;;  %p643_p0 = scmp.ne.s32.totalorder %s1059_s1, %s642_s9  ;;  %s35_s28 = int_to_ptr.vmem [resolvable:$true] %s34_s28 }
   0x7   :  { %p646_p1 = scmp.lt.u32.totalorder %s642_s9, %s1059_s1 }
   0x9   :  { %p648_p2 = pnand %p646_p1, %p643_p0 }
   0xb   :  { %651 = shalt.err (!%p648_p2)
}
   0xc   :  { %s652_s14 = scalar_lea.vmem %s35_s28, 256  ;;  %p657_p4 = scmp.lt.s32.totalorder %s35_s28, %s35_s28 }
   0xd   :  { %p653_p3 = scmp.ne.s32.totalorder %s35_s28, %s652_s14  ;;  %p658_p5 = scmp.lt.s32.totalorder %s652_s14, %s652_s14 }
   0xf   :  { %p659_p6 = por %p658_p5, %p657_p4 }
  0x11   :  { %p660_p7 = pnand %p659_p6, %p653_p3 }
  0x13   :  { %663 = shalt.err (!%p660_p7)
}
  0x14   :  { %s853_s15 = smov 64   ;;  %s854_s16 = smov 4  }
  0x15   :  { %40 = dma.hbm_to_vmem [thread:$0]  %s1059_s1, 256, %s35_s28, [#allocation6], %s853_s15, %s853_s15, %s854_s16  }
  0x16   :  { %s855_s19 = smov [#allocation8]   ;;  %s856_s21 = smov [#allocation11]  }
  0x17   :  { %s56_s20 = sshll.u32 %s855_s19, 4  ;;  %s78_s22 = sshll.u32 %s856_s21, 4  ;;  %s57_s20 = int_to_ptr.vmem [resolvable:$true] %s56_s20  ;;  %s79_s22 = int_to_ptr.vmem [resolvable:$true] %s78_s22 }
  0x18   :  { %s664_s25 = scalar_lea.hbm %s1061_s3, 256 }
  0x19   :  { %p665_p8 = scmp.ne.s32.totalorder %s1061_s3, %s664_s25  ;;  %p668_p9 = scmp.lt.u32.totalorder %s664_s25, %s1061_s3 }
  0x1b   :  { %p670_p10 = pnand %p668_p9, %p665_p8 }
  0x1d   :  { %673 = shalt.err (!%p670_p10)
}
  0x1e   :  { %s674_s1 = scalar_lea.vmem %s57_s20, 256  ;;  %p679_p12 = scmp.lt.s32.totalorder %s57_s20, %s57_s20 }
  0x1f   :  { %p675_p11 = scmp.ne.s32.totalorder %s57_s20, %s674_s1  ;;  %p680_p13 = scmp.lt.s32.totalorder %s674_s1, %s674_s1 }
  0x21   :  { %p681_p0 = por %p680_p13, %p679_p12 }
  0x23   :  { %p682_p1 = pnand %p681_p0, %p675_p11 }
  0x25   :  { %685 = shalt.err (!%p682_p1)
}
  0x26   :  { %62 = dma.hbm_to_vmem [thread:$0]  %s1061_s3, 256, %s57_s20, [#allocation9], %s853_s15, %s853_s15, %s854_s16  }
  0x27   :  { %s686_s12 = scalar_lea.hbm %s1063_s5, 1024 }
  0x28   :  { %p687_p2 = scmp.ne.s32.totalorder %s1063_s5, %s686_s12  ;;  %p690_p3 = scmp.lt.u32.totalorder %s686_s12, %s1063_s5 }
  0x2a   :  { %p692_p4 = pnand %p690_p3, %p687_p2 }
  0x2c   :  { %695 = shalt.err (!%p692_p4)
}
  0x2d   :  { %s696_s19 = scalar_lea.vmem %s79_s22, 1024  ;;  %p701_p6 = scmp.lt.s32.totalorder %s79_s22, %s79_s22 }
  0x2e   :  { %p697_p5 = scmp.ne.s32.totalorder %s79_s22, %s696_s19  ;;  %p702_p7 = scmp.lt.s32.totalorder %s696_s19, %s696_s19 }
  0x30   :  { %p703_p8 = por %p702_p7, %p701_p6 }
  0x32   :  { %p704_p9 = pnand %p703_p8, %p697_p5 }
  0x34   :  { %707 = shalt.err (!%p704_p9)
}
  0x35   :  { %84 = dma.hbm_to_vmem [thread:$0]  %s1063_s5, 1024, %s79_s22, [#allocation12], %s853_s15, %s853_s15, %s854_s16  }
  0x36   :  { %s857_s21 = smov [#allocation2]   ;;  %s858_s24 = smov [#allocation7]  }
  0x37   :  { %s25_s23 = sshll.u32 %s857_s21, 4  ;;  %s47_s25 = sshll.u32 %s858_s24, 4  ;;  %s26_s23 = int_to_ptr.vmem [resolvable:$true] %s25_s23  ;;  %s48_s25 = int_to_ptr.vmem [resolvable:$true] %s47_s25 }
  0x38   :  { %s708_s29 = scalar_lea.hbm %s1058_s0, 128 }
  0x39   :  { %p709_p10 = scmp.ne.s32.totalorder %s1058_s0, %s708_s29  ;;  %p712_p11 = scmp.lt.u32.totalorder %s708_s29, %s1058_s0 }
  0x3b   :  { %p714_p12 = pnand %p712_p11, %p709_p10 }
  0x3d   :  { %717 = shalt.err (!%p714_p12)
}
  0x3e   :  { %s718_s5 = scalar_lea.vmem %s26_s23, 128  ;;  %p723_p0 = scmp.lt.s32.totalorder %s26_s23, %s26_s23 }
  0x3f   :  { %p719_p13 = scmp.ne.s32.totalorder %s26_s23, %s718_s5  ;;  %p724_p1 = scmp.lt.s32.totalorder %s718_s5, %s718_s5 }
  0x41   :  { %p725_p2 = por %p724_p1, %p723_p0 }
  0x43   :  { %p726_p3 = pnand %p725_p2, %p719_p13 }
  0x45   :  { %729 = shalt.err (!%p726_p3)
}
  0x46   :  { %28 = dma.hbm_to_vmem [thread:$0]  %s1058_s0, 128, %s26_s23, [#allocation3]  }
  0x47   :  { %s730_s13 = scalar_lea.hbm %s1060_s2, 16 }
  0x48   :  { %p731_p4 = scmp.ne.s32.totalorder %s1060_s2, %s730_s13  ;;  %p734_p5 = scmp.lt.u32.totalorder %s730_s13, %s1060_s2 }
  0x4a   :  { %p736_p6 = pnand %p734_p5, %p731_p4 }
  0x4c   :  { %739 = shalt.err (!%p736_p6)
}
  0x4d   :  { %s740_s3 = scalar_lea.vmem %s48_s25, 16  ;;  %s744_s20 = scalar_lea.vmem %s48_s25, 32 }
  0x4e   :  { %p741_p7 = scmp.ne.s32.totalorder %s48_s25, %s740_s3  ;;  %p745_p8 = scmp.lt.s32.totalorder %s48_s25, %s48_s25 }
  0x4f   :  { %p746_p9 = scmp.lt.s32.totalorder %s744_s20, %s740_s3 }
  0x51   :  { %p747_p10 = por %p746_p9, %p745_p8 }
  0x53   :  { %p748_p11 = pnand %p747_p10, %p741_p7 }
  0x55   :  { %751 = shalt.err (!%p748_p11)
}
  0x56   :  { %50 = dma.hbm_to_vmem [thread:$0]  %s1060_s2, 16, %s48_s25, [#allocation6]  }
  0x57   :  { %s859_s23 = smov [#allocation10]   ;;  %s860_s26 = smov [#allocation13]  }
  0x58   :  { %s69_s24 = sshll.u32 %s859_s23, 4  ;;  %s90_s27 = sshll.u32 %s860_s26, 4  ;;  %s70_s24 = int_to_ptr.vmem [resolvable:$true] %s69_s24  ;;  %s91_s27 = int_to_ptr.vmem [resolvable:$true] %s90_s27 }
  0x59   :  { %s752_s1 = scalar_lea.hbm %s1062_s4, 16 }
  0x5a   :  { %p753_p12 = scmp.ne.s32.totalorder %s1062_s4, %s752_s1  ;;  %p756_p13 = scmp.lt.u32.totalorder %s752_s1, %s1062_s4 }
  0x5c   :  { %p758_p0 = pnand %p756_p13, %p753_p12 }
  0x5e   :  { %761 = shalt.err (!%p758_p0)
}
  0x5f   :  { %s762_s2 = scalar_lea.vmem %s70_s24, 16  ;;  %s766_s25 = scalar_lea.vmem %s70_s24, 32 }
  0x60   :  { %p763_p1 = scmp.ne.s32.totalorder %s70_s24, %s762_s2  ;;  %p767_p2 = scmp.lt.s32.totalorder %s70_s24, %s70_s24 }
  0x61   :  { %p768_p3 = scmp.lt.s32.totalorder %s766_s25, %s762_s2 }
  0x63   :  { %p769_p4 = por %p768_p3, %p767_p2 }
  0x65   :  { %p770_p5 = pnand %p769_p4, %p763_p1 }
  0x67   :  { %773 = shalt.err (!%p770_p5)
}
  0x68   :  { %72 = dma.hbm_to_vmem [thread:$0]  %s1062_s4, 16, %s70_s24, [#allocation9]  }
  0x69   :  { %s774_s14 = scalar_lea.hbm %s1064_s6, 1024 }
  0x6a   :  { %p775_p6 = scmp.ne.s32.totalorder %s1064_s6, %s774_s14  ;;  %p778_p7 = scmp.lt.u32.totalorder %s774_s14, %s1064_s6 }
  0x6c   :  { %p780_p8 = pnand %p778_p7, %p775_p6 }
  0x6e   :  { %783 = shalt.err (!%p780_p8)
}
  0x6f   :  { %s784_s20 = scalar_lea.vmem %s91_s27, 1024  ;;  %p789_p10 = scmp.lt.s32.totalorder %s91_s27, %s91_s27 }
  0x70   :  { %p785_p9 = scmp.ne.s32.totalorder %s91_s27, %s784_s20  ;;  %p790_p11 = scmp.lt.s32.totalorder %s784_s20, %s784_s20 }
  0x72   :  { %p791_p12 = por %p790_p11, %p789_p10 }
  0x74   :  { %p792_p13 = pnand %p791_p12, %p785_p9 }
  0x76   :  { %795 = shalt.err (!%p792_p13)
}
  0x77   :  { %96 = dma.hbm_to_vmem [thread:$0]  %s1064_s6, 1024, %s91_s27, [#allocation12], %s853_s15, %s853_s15, %s854_s16  }
  0x78   :  { %s861_s21 = smov [#allocation14]   ;;  %s796_s29 = scalar_lea.hbm %s1065_s7, 16 }
  0x79   :  { %s103_s23 = sshll.u32 %s861_s21, 4  ;;  %p797_p0 = scmp.ne.s32.totalorder %s1065_s7, %s796_s29  ;;  %s104_s23 = int_to_ptr.vmem [resolvable:$true] %s103_s23 }
  0x7a   :  { %p800_p1 = scmp.lt.u32.totalorder %s796_s29, %s1065_s7 }
  0x7c   :  { %p802_p2 = pnand %p800_p1, %p797_p0 }
  0x7e   :  { %805 = shalt.err (!%p802_p2)
}
  0x7f   :  { %s806_s5 = scalar_lea.vmem %s104_s23, 16  ;;  %s810_s6 = scalar_lea.vmem %s104_s23, 32 }
  0x80   :  { %p807_p3 = scmp.ne.s32.totalorder %s104_s23, %s806_s5  ;;  %p811_p4 = scmp.lt.s32.totalorder %s104_s23, %s104_s23 }
  0x81   :  { %p812_p5 = scmp.lt.s32.totalorder %s810_s6, %s806_s5 }
  0x83   :  { %p813_p6 = por %p812_p5, %p811_p4 }
  0x85   :  { %p814_p7 = pnand %p813_p6, %p807_p3 }
  0x87   :  { %817 = shalt.err (!%p814_p7)
}
  0x88   :  { %106 = dma.hbm_to_vmem [thread:$0]  %s1065_s7, 16, %s104_s23, [#allocation15]  }
  0x89   :  { %840 = dma.done.wait [#allocation3], 128  }
  0x8a   :  { %841 = vsyncadd [#allocation3], 4294967168 }
  0x8b   :  { %842 = dma.done.wait [#allocation6], 272  }
  0x8c   :  { %843 = vsyncadd [#allocation6], 4294967024 }
  0x8d   :  { %844 = dma.done.wait [#allocation9], 272  }
  0x8e   :  { %845 = vsyncadd [#allocation9], 4294967024 }
  0x8f   :  { %846 = dma.done.wait [#allocation12], 2048  }
  0x90   :  { %847 = vsyncadd [#allocation12], 4294965248 }
  0x91   :  { %848 = dma.done.wait [#allocation15], 16  }
  0x92   :  { %849 = vsyncadd [#allocation15], 4294967280  ;;  %v862_v0 = vmov 0.0   ;;  %vm863_vm0 = vmmov 0   ;;  %v622_v1 = vld [vmem:[#allocation5] sm:$0xff]   ;;  %v623_v2 = vld [vmem:[#allocation8] sm:$0xff]  }
  0x93   :  { %553 = vmatprep.subr.bf16.mxu0 %v862_v0  ;;  %561 = vmatprep.subr.bf16.mxu1 %v862_v0  ;;  %v624_v3 = vld [vmem:[#allocation5 + $0x8] sm:$0xff]   ;;  %v625_v4 = vld [vmem:[#allocation8 + $0x8] sm:$0xff]   ;;  %vm157_vm1 = vcmask 261120   ;;  %v504_v23 = vld [vmem:[#allocation7] ss:$0 sm:$0xff]  ;;  %s864_s7 = smov [#allocation16]  }
  0x94   :  { %557 = vmatprep.mubr.msk.bf16.mxu0 %vm863_vm0, %v862_v0  ;;  %565 = vmatprep.mubr.msk.bf16.mxu1 %vm863_vm0, %v862_v0  ;;  %v132_v5 = vld [vmem:[#allocation2] sm:$0xff]  ;;  %v626_v7 = vld [vmem:[#allocation13] sm:$0xff]   ;;  %v628_v9 = vld [vmem:[#allocation13 + $0x8] sm:$0xff]   ;;  %s491_s27 = sshll.u32 %s864_s7, 4  ;;  %s492_s27 = int_to_ptr.vmem [resolvable:$true] %s491_s27 }
  0x95   :  { %554 = vmatpush3.bf16.msra.mxu0 %v622_v1  ;;  %562 = vmatpush3.bf16.msra.mxu1 %v623_v2  ;;  %v138_v6 = vpack.c.bf16 %v132_v5, %v132_v5  ;;  %v627_v8 = vld [vmem:[#allocation11] sm:$0xff]   ;;  %v629_v10 = vld [vmem:[#allocation11 + $0x8] sm:$0xff]   ;;  %v630_v11 = vld [vmem:[#allocation13 + $0x10] sm:$0xff]   ;;  %s818_s22 = scalar_lea.vmem %s492_s27, 128  ;;  %p823_p9 = scmp.lt.s32.totalorder %s492_s27, %s492_s27 }
  0x96   :  { %555 = vmatprep.subr.bf16.mxu0 %v862_v0  ;;  %563 = vmatprep.subr.bf16.mxu1 %v862_v0  ;;  %v631_v12 = vld [vmem:[#allocation11 + $0x10] sm:$0xff]   ;;  %v632_v13 = vld [vmem:[#allocation13 + $0x18] sm:$0xff]   ;;  %v634_v15 = vld [vmem:[#allocation13 + $0x20] sm:$0xff]   ;;  %p819_p8 = scmp.ne.s32.totalorder %s492_s27, %s818_s22  ;;  %p824_p10 = scmp.lt.s32.totalorder %s818_s22, %s818_s22 }
  0x97   :  { %v633_v14 = vld [vmem:[#allocation11 + $0x18] sm:$0xff]   ;;  %v635_v16 = vld [vmem:[#allocation11 + $0x20] sm:$0xff]   ;;  %v636_v17 = vld [vmem:[#allocation13 + $0x28] sm:$0xff]  }
  0x98   :  { %v637_v18 = vld [vmem:[#allocation11 + $0x28] sm:$0xff]   ;;  %v638_v19 = vld [vmem:[#allocation13 + $0x30] sm:$0xff]   ;;  %v640_v21 = vld [vmem:[#allocation13 + $0x38] sm:$0xff]   ;;  %p825_p11 = por %p824_p10, %p823_p9 }
  0x99   :  { %556 = vmatpush3.bf16.msra.mxu0 %v624_v3  ;;  %564 = vmatpush3.bf16.msra.mxu1 %v625_v4  ;;  %v639_v20 = vld [vmem:[#allocation11 + $0x30] sm:$0xff]   ;;  %v641_v22 = vld [vmem:[#allocation11 + $0x38] sm:$0xff]   ;;  %v528_v41 = vld [vmem:[#allocation14] ss:$0 sm:$0xff] }
  0x9a   :  { %569 = vmatprep.subr.bf16.mxu0 %v862_v0  ;;  %589 = vmatprep.subr.bf16.mxu1 %v862_v0  ;;  %v508_v24 = vld [vmem:[#allocation10] ss:$0 sm:$0xff]  ;;  %p826_p12 = pnand %p825_p11, %p819_p8 }
  0x9c   :  { %558 = vmatmul.mubr.msk.bf16.vlgmr.msra.gmra.mrb[0].mxu0 %vm157_vm1, %v138_v6  ;;  %566 = vmatmul.mubr.msk.bf16.vlgmr.msra.gmra.mrb[0].mxu1 %vm157_vm1, %v138_v6 }
  0x9d   :  { %570 = vmatpush3.bf16.msra.mxu0 %v626_v7  ;;  %590 = vmatpush3.bf16.msra.mxu1 %v627_v8 }
  0x9e   :  { %571 = vmatprep.subr.bf16.mxu0 %v862_v0  ;;  %591 = vmatprep.subr.bf16.mxu1 %v862_v0 }
  0x9f   :  { %585 = vmatprep.mubr.msk.bf16.mxu0 %vm863_vm0, %v862_v0  ;;  %605 = vmatprep.mubr.msk.bf16.mxu1 %vm863_vm0, %v862_v0 }
  0xa1   :  { %572 = vmatpush3.bf16.msra.mxu0 %v628_v9  ;;  %592 = vmatpush3.bf16.msra.mxu1 %v629_v10 }
  0xa2   :  { %573 = vmatprep.subr.bf16.mxu0 %v862_v0  ;;  %593 = vmatprep.subr.bf16.mxu1 %v862_v0 }
  0xa5   :  { %574 = vmatpush3.bf16.msra.mxu0 %v630_v11  ;;  %594 = vmatpush3.bf16.msra.mxu1 %v631_v12 }
  0xa6   :  { %575 = vmatprep.subr.bf16.mxu0 %v862_v0  ;;  %595 = vmatprep.subr.bf16.mxu1 %v862_v0 }
  0xa9   :  { %576 = vmatpush3.bf16.msra.mxu0 %v632_v13  ;;  %596 = vmatpush3.bf16.msra.mxu1 %v633_v14 }
  0xaa   :  { %577 = vmatprep.subr.bf16.mxu0 %v862_v0  ;;  %597 = vmatprep.subr.bf16.mxu1 %v862_v0 }
  0xad   :  { %578 = vmatpush3.bf16.msra.mxu0 %v634_v15  ;;  %598 = vmatpush3.bf16.msra.mxu1 %v635_v16 }
  0xae   :  { %579 = vmatprep.subr.bf16.mxu0 %v862_v0  ;;  %599 = vmatprep.subr.bf16.mxu1 %v862_v0 }
  0xb1   :  { %580 = vmatpush3.bf16.msra.mxu0 %v636_v17  ;;  %600 = vmatpush3.bf16.msra.mxu1 %v637_v18 }
  0xb2   :  { %581 = vmatprep.subr.bf16.mxu0 %v862_v0  ;;  %601 = vmatprep.subr.bf16.mxu1 %v862_v0 }
  0xb5   :  { %582 = vmatpush3.bf16.msra.mxu0 %v638_v19  ;;  %602 = vmatpush3.bf16.msra.mxu1 %v639_v20 }
  0xb6   :  { %583 = vmatprep.subr.bf16.mxu0 %v862_v0  ;;  %603 = vmatprep.subr.bf16.mxu1 %v862_v0 }
  0xb9   :  { %584 = vmatpush3.bf16.msra.mxu0 %v640_v21  ;;  %604 = vmatpush3.bf16.msra.mxu1 %v641_v22 }
 0x16f   :  { %v195_v25 = vpop.f32.mrb[0].mxu0  ;;  %v259_v27 = vpop.f32.mrb[0].mxu1 }
 0x170   :  { %v196_v26 = vadd.f32 %v504_v23, %v195_v25  ;;  %v559_v28 = vpop.f32.mrb[1].mxu0  ;;  %v260_v29 = vadd.f32 %v508_v24, %v259_v27  ;;  %v567_v30 = vpop.f32.mrb[1].mxu1 }
 0x171   :  { %v198_v31 = vpop.f32.mrb[2].mxu0  ;;  %v262_v33 = vpop.f32.mrb[2].mxu1 }
 0x172   :  { %v201_v32 = vmax.f32 %v196_v26, 0.0  ;;  %v560_v34 = vpop.f32.mrb[3].mxu0  ;;  %v265_v35 = vmax.f32 %v260_v29, 0.0  ;;  %v568_v36 = vpop.f32.mrb[3].mxu1 }
 0x174   :  { %v266_v37 = vpack.c.bf16 %v201_v32, %v201_v32  ;;  %v283_v38 = vpack.c.bf16 %v265_v35, %v265_v35 }
 0x176   :  { %606 = vmatmul.mubr.bf16.vlgmr.msra.gmra.mrb[4].mxu1 %v266_v37  ;;  %586 = vmatmul.mubr.bf16.vlgmr.msra.gmra.mrb[4].mxu0 %v283_v38 }
 0x249   :  { %v470_v39 = vpop.f32.mrb[4].mxu1  ;;  %v382_v40 = vpop.f32.mrb[4].mxu0 }
 0x24a   :  { %v607_v42 = vpop.f32.mrb[5].mxu1  ;;  %v471_v43 = vadd.f32 %v470_v39, %v382_v40  ;;  %v587_v44 = vpop.f32.mrb[5].mxu0 }
 0x24b   :  { %v473_v45 = vpop.f32.mrb[6].mxu1  ;;  %v385_v46 = vpop.f32.mrb[6].mxu0 }
 0x24c   :  { %v608_v47 = vpop.f32.mrb[7].mxu1  ;;  %v483_v48 = vadd.f32 %v528_v41, %v471_v43  ;;  %v588_v49 = vpop.f32.mrb[7].mxu0 }
 0x24e   :  { %484 = vst [vmem:[#allocation16] sm:$0xff] %v483_v48 }
 0x24f   :  { %829 = shalt.err (!%p826_p12)
}
 0x250   :  { %s830_s10 = scalar_lea.hbm %s1066_s8, 128 }
 0x251   :  { %p831_p13 = scmp.ne.s32.totalorder %s1066_s8, %s830_s10  ;;  %p834_p0 = scmp.lt.u32.totalorder %s830_s10, %s1066_s8 }
 0x253   :  { %p836_p1 = pnand %p834_p0, %p831_p13 }
 0x255   :  { %839 = shalt.err (!%p836_p1)
}
 0x256   :  { %494 = dma.vmem_to_hbm [thread:$0]  %s492_s27, 128, %s1066_s8, [#allocation4]  }
 0x257   :  { %850 = dma.done.wait [#allocation4], 128  }
 0x258   :  { %851 = vsyncadd [#allocation4], 4294967168 }
 0x259   :  { %498 = vsyncpa [#allocation3], 1 }
 0x25a   :  { %499 = vsyncpa [#allocation6], 1 }
 0x25b   :  { %500 = vsyncpa [#allocation9], 1 }
 0x25c   :  { %501 = vsyncpa [#allocation12], 1 }
 0x25d   :  { %502 = vsyncpa [#allocation15], 1 }
 0x25e   :  { %503 = vsyncpa [#allocation4], 1 }

// kernel: tpu_custom_call.1
= control target key start
LH: loop header
LB: loop body
LE: loop exit
PB: predicated region body
PF: predicated region fallthrough
CT: control target
= control target key end

     0   :  { %13 = vsyncpa [#allocation3], 0  ;;  %s1058_s0 = inlined_call_operand.hbm [shape: f32[8,32], index: 0, kind: input, shape index: {}]   ;;  %s1059_s1 = inlined_call_operand.hbm [shape: bf16[32,128], index: 1, kind: input, shape index: {}]   ;;  %s1060_s2 = inlined_call_operand.hbm [shape: f32[1,128], index: 2, kind: input, shape index: {}]   ;;  %s1061_s3 = inlined_call_operand.hbm [shape: bf16[32,128], index: 3, kind: input, shape index: {}]   ;;  %s1062_s4 = inlined_call_operand.hbm [shape: f32[1,128], index: 4, kind: input, shape index: {}]   ;;  %s1063_s5 = inlined_call_operand.hbm [shape: bf16[128,128], index: 5, kind: input, shape index: {}]   ;;  %s1064_s6 = inlined_call_operand.hbm [shape: bf16[128,128], index: 6, kind: input, shape index: {}]   ;;  %s1065_s7 = inlined_call_operand.hbm [shape: f32[1,128], index: 7, kind: input, shape index: {}]   ;;  %s1066_s8 = inlined_call_operand.hbm [shape: f32[8,128], index: 8, kind: output, shape index: {}]  }
   0x1   :  { %14 = vsyncpa [#allocation6], 0 }
   0x2   :  { %15 = vsyncpa [#allocation9], 0 }
   0x3   :  { %16 = vsyncpa [#allocation12], 0 }
   0x4   :  { %17 = vsyncpa [#allocation15], 0 }
   0x5   :  { %18 = vsyncpa [#allocation4], 0  ;;  %s852_s27 = smov [#allocation5]   ;;  %s642_s9 = scalar_lea.hbm %s1059_s1, 256 }
   0x6   :  { %s34_s28 = sshll.u32 %s852_s27, 4  ;;  %p643_p0 = scmp.ne.s32.totalorder %s1059_s1, %s642_s9  ;;  %s35_s28 = int_to_ptr.vmem [resolvable:$true] %s34_s28 }
   0x7   :  { %p646_p1 = scmp.lt.u32.totalorder %s642_s9, %s1059_s1 }
   0x9   :  { %p648_p2 = pnand %p646_p1, %p643_p0 }
   0xb   :  { %651 = shalt.err (!%p648_p2)
}
   0xc   :  { %s652_s14 = scalar_lea.vmem %s35_s28, 256  ;;  %p657_p4 = scmp.lt.s32.totalorder %s35_s28, %s35_s28 }
   0xd   :  { %p653_p3 = scmp.ne.s32.totalorder %s35_s28, %s652_s14  ;;  %p658_p5 = scmp.lt.s32.totalorder %s652_s14, %s652_s14 }
   0xf   :  { %p659_p6 = por %p658_p5, %p657_p4 }
  0x11   :  { %p660_p7 = pnand %p659_p6, %p653_p3 }
  0x13   :  { %663 = shalt.err (!%p660_p7)
}
  0x14   :  { %s853_s15 = smov 64   ;;  %s854_s16 = smov 4  }
  0x15   :  { %40 = dma.hbm_to_vmem [thread:$0]  %s1059_s1, 256, %s35_s28, [#allocation6], %s853_s15, %s853_s15, %s854_s16  }
  0x16   :  { %s855_s19 = smov [#allocation8]   ;;  %s856_s21 = smov [#allocation11]  }
  0x17   :  { %s56_s20 = sshll.u32 %s855_s19, 4  ;;  %s78_s22 = sshll.u32 %s856_s21, 4  ;;  %s57_s20 = int_to_ptr.vmem [resolvable:$true] %s56_s20  ;;  %s79_s22 = int_to_ptr.vmem [resolvable:$true] %s78_s22 }
  0x18   :  { %s664_s25 = scalar_lea.hbm %s1061_s3, 256 }
  0x19   :  { %p665_p8 = scmp.ne.s32.totalorder %s1061_s3, %s664_s25  ;;  %p668_p9 = scmp.lt.u32.totalorder %s664_s25, %s1061_s3 }
  0x1b   :  { %p670_p10 = pnand %p668_p9, %p665_p8 }
  0x1d   :  { %673 = shalt.err (!%p670_p10)
}
  0x1e   :  { %s674_s1 = scalar_lea.vmem %s57_s20, 256  ;;  %p679_p12 = scmp.lt.s32.totalorder %s57_s20, %s57_s20 }
  0x1f   :  { %p675_p11 = scmp.ne.s32.totalorder %s57_s20, %s674_s1  ;;  %p680_p13 = scmp.lt.s32.totalorder %s674_s1, %s674_s1 }
  0x21   :  { %p681_p0 = por %p680_p13, %p679_p12 }
  0x23   :  { %p682_p1 = pnand %p681_p0, %p675_p11 }
  0x25   :  { %685 = shalt.err (!%p682_p1)
}
  0x26   :  { %62 = dma.hbm_to_vmem [thread:$0]  %s1061_s3, 256, %s57_s20, [#allocation9], %s853_s15, %s853_s15, %s854_s16  }
  0x27   :  { %s686_s12 = scalar_lea.hbm %s1063_s5, 1024 }
  0x28   :  { %p687_p2 = scmp.ne.s32.totalorder %s1063_s5, %s686_s12  ;;  %p690_p3 = scmp.lt.u32.totalorder %s686_s12, %s1063_s5 }
  0x2a   :  { %p692_p4 = pnand %p690_p3, %p687_p2 }
  0x2c   :  { %695 = shalt.err (!%p692_p4)
}
  0x2d   :  { %s696_s19 = scalar_lea.vmem %s79_s22, 1024  ;;  %p701_p6 = scmp.lt.s32.totalorder %s79_s22, %s79_s22 }
  0x2e   :  { %p697_p5 = scmp.ne.s32.totalorder %s79_s22, %s696_s19  ;;  %p702_p7 = scmp.lt.s32.totalorder %s696_s19, %s696_s19 }
  0x30   :  { %p703_p8 = por %p702_p7, %p701_p6 }
  0x32   :  { %p704_p9 = pnand %p703_p8, %p697_p5 }
  0x34   :  { %707 = shalt.err (!%p704_p9)
}
  0x35   :  { %84 = dma.hbm_to_vmem [thread:$0]  %s1063_s5, 1024, %s79_s22, [#allocation12], %s853_s15, %s853_s15, %s854_s16  }
  0x36   :  { %s857_s21 = smov [#allocation2]   ;;  %s858_s24 = smov [#allocation7]  }
  0x37   :  { %s25_s23 = sshll.u32 %s857_s21, 4  ;;  %s47_s25 = sshll.u32 %s858_s24, 4  ;;  %s26_s23 = int_to_ptr.vmem [resolvable:$true] %s25_s23  ;;  %s48_s25 = int_to_ptr.vmem [resolvable:$true] %s47_s25 }
  0x38   :  { %s708_s29 = scalar_lea.hbm %s1058_s0, 128 }
  0x39   :  { %p709_p10 = scmp.ne.s32.totalorder %s1058_s0, %s708_s29  ;;  %p712_p11 = scmp.lt.u32.totalorder %s708_s29, %s1058_s0 }
  0x3b   :  { %p714_p12 = pnand %p712_p11, %p709_p10 }
  0x3d   :  { %717 = shalt.err (!%p714_p12)
}
  0x3e   :  { %s718_s5 = scalar_lea.vmem %s26_s23, 128  ;;  %p723_p0 = scmp.lt.s32.totalorder %s26_s23, %s26_s23 }
  0x3f   :  { %p719_p13 = scmp.ne.s32.totalorder %s26_s23, %s718_s5  ;;  %p724_p1 = scmp.lt.s32.totalorder %s718_s5, %s718_s5 }
  0x41   :  { %p725_p2 = por %p724_p1, %p723_p0 }
  0x43   :  { %p726_p3 = pnand %p725_p2, %p719_p13 }
  0x45   :  { %729 = shalt.err (!%p726_p3)
}
  0x46   :  { %28 = dma.hbm_to_vmem [thread:$0]  %s1058_s0, 128, %s26_s23, [#allocation3]  }
  0x47   :  { %s730_s13 = scalar_lea.hbm %s1060_s2, 16 }
  0x48   :  { %p731_p4 = scmp.ne.s32.totalorder %s1060_s2, %s730_s13  ;;  %p734_p5 = scmp.lt.u32.totalorder %s730_s13, %s1060_s2 }
  0x4a   :  { %p736_p6 = pnand %p734_p5, %p731_p4 }
  0x4c   :  { %739 = shalt.err (!%p736_p6)
}
  0x4d   :  { %s740_s3 = scalar_lea.vmem %s48_s25, 16  ;;  %s744_s20 = scalar_lea.vmem %s48_s25, 32 }
  0x4e   :  { %p741_p7 = scmp.ne.s32.totalorder %s48_s25, %s740_s3  ;;  %p745_p8 = scmp.lt.s32.totalorder %s48_s25, %s48_s25 }
  0x4f   :  { %p746_p9 = scmp.lt.s32.totalorder %s744_s20, %s740_s3 }
  0x51   :  { %p747_p10 = por %p746_p9, %p745_p8 }
  0x53   :  { %p748_p11 = pnand %p747_p10, %p741_p7 }
  0x55   :  { %751 = shalt.err (!%p748_p11)
}
  0x56   :  { %50 = dma.hbm_to_vmem [thread:$0]  %s1060_s2, 16, %s48_s25, [#allocation6]  }
  0x57   :  { %s859_s23 = smov [#allocation10]   ;;  %s860_s26 = smov [#allocation13]  }
  0x58   :  { %s69_s24 = sshll.u32 %s859_s23, 4  ;;  %s90_s27 = sshll.u32 %s860_s26, 4  ;;  %s70_s24 = int_to_ptr.vmem [resolvable:$true] %s69_s24  ;;  %s91_s27 = int_to_ptr.vmem [resolvable:$true] %s90_s27 }
  0x59   :  { %s752_s1 = scalar_lea.hbm %s1062_s4, 16 }
  0x5a   :  { %p753_p12 = scmp.ne.s32.totalorder %s1062_s4, %s752_s1  ;;  %p756_p13 = scmp.lt.u32.totalorder %s752_s1, %s1062_s4 }
  0x5c   :  { %p758_p0 = pnand %p756_p13, %p753_p12 }
  0x5e   :  { %761 = shalt.err (!%p758_p0)
}
  0x5f   :  { %s762_s2 = scalar_lea.vmem %s70_s24, 16  ;;  %s766_s25 = scalar_lea.vmem %s70_s24, 32 }
  0x60   :  { %p763_p1 = scmp.ne.s32.totalorder %s70_s24, %s762_s2  ;;  %p767_p2 = scmp.lt.s32.totalorder %s70_s24, %s70_s24 }
  0x61   :  { %p768_p3 = scmp.lt.s32.totalorder %s766_s25, %s762_s2 }
  0x63   :  { %p769_p4 = por %p768_p3, %p767_p2 }
  0x65   :  { %p770_p5 = pnand %p769_p4, %p763_p1 }
  0x67   :  { %773 = shalt.err (!%p770_p5)
}
  0x68   :  { %72 = dma.hbm_to_vmem [thread:$0]  %s1062_s4, 16, %s70_s24, [#allocation9]  }
  0x69   :  { %s774_s14 = scalar_lea.hbm %s1064_s6, 1024 }
  0x6a   :  { %p775_p6 = scmp.ne.s32.totalorder %s1064_s6, %s774_s14  ;;  %p778_p7 = scmp.lt.u32.totalorder %s774_s14, %s1064_s6 }
  0x6c   :  { %p780_p8 = pnand %p778_p7, %p775_p6 }
  0x6e   :  { %783 = shalt.err (!%p780_p8)
}
  0x6f   :  { %s784_s20 = scalar_lea.vmem %s91_s27, 1024  ;;  %p789_p10 = scmp.lt.s32.totalorder %s91_s27, %s91_s27 }
  0x70   :  { %p785_p9 = scmp.ne.s32.totalorder %s91_s27, %s784_s20  ;;  %p790_p11 = scmp.lt.s32.totalorder %s784_s20, %s784_s20 }
  0x72   :  { %p791_p12 = por %p790_p11, %p789_p10 }
  0x74   :  { %p792_p13 = pnand %p791_p12, %p785_p9 }
  0x76   :  { %795 = shalt.err (!%p792_p13)
}
  0x77   :  { %96 = dma.hbm_to_vmem [thread:$0]  %s1064_s6, 1024, %s91_s27, [#allocation12], %s853_s15, %s853_s15, %s854_s16  }
  0x78   :  { %s861_s21 = smov [#allocation14]   ;;  %s796_s29 = scalar_lea.hbm %s1065_s7, 16 }
  0x79   :  { %s103_s23 = sshll.u32 %s861_s21, 4  ;;  %p797_p0 = scmp.ne.s32.totalorder %s1065_s7, %s796_s29  ;;  %s104_s23 = int_to_ptr.vmem [resolvable:$true] %s103_s23 }
  0x7a   :  { %p800_p1 = scmp.lt.u32.totalorder %s796_s29, %s1065_s7 }
  0x7c   :  { %p802_p2 = pnand %p800_p1, %p797_p0 }
  0x7e   :  { %805 = shalt.err (!%p802_p2)
}
  0x7f   :  { %s806_s5 = scalar_lea.vmem %s104_s23, 16  ;;  %s810_s6 = scalar_lea.vmem %s104_s23, 32 }
  0x80   :  { %p807_p3 = scmp.ne.s32.totalorder %s104_s23, %s806_s5  ;;  %p811_p4 = scmp.lt.s32.totalorder %s104_s23, %s104_s23 }
  0x81   :  { %p812_p5 = scmp.lt.s32.totalorder %s810_s6, %s806_s5 }
  0x83   :  { %p813_p6 = por %p812_p5, %p811_p4 }
  0x85   :  { %p814_p7 = pnand %p813_p6, %p807_p3 }
  0x87   :  { %817 = shalt.err (!%p814_p7)
}
  0x88   :  { %106 = dma.hbm_to_vmem [thread:$0]  %s1065_s7, 16, %s104_s23, [#allocation15]  }
  0x89   :  { %840 = dma.done.wait [#allocation3], 128  }
  0x8a   :  { %841 = vsyncadd [#allocation3], 4294967168 }
  0x8b   :  { %842 = dma.done.wait [#allocation6], 272  }
  0x8c   :  { %843 = vsyncadd [#allocation6], 4294967024 }
  0x8d   :  { %844 = dma.done.wait [#allocation9], 272  }
  0x8e   :  { %845 = vsyncadd [#allocation9], 4294967024 }
  0x8f   :  { %846 = dma.done.wait [#allocation12], 2048  }
  0x90   :  { %847 = vsyncadd [#allocation12], 4294965248 }
  0x91   :  { %848 = dma.done.wait [#allocation15], 16  }
  0x92   :  { %849 = vsyncadd [#allocation15], 4294967280  ;;  %v862_v0 = vmov 0.0   ;;  %vm863_vm0 = vmmov 0   ;;  %v622_v1 = vld [vmem:[#allocation5] sm:$0xff]   ;;  %v623_v2 = vld [vmem:[#allocation8] sm:$0xff]  }
  0x93   :  { %553 = vmatprep.subr.bf16.mxu0 %v862_v0  ;;  %561 = vmatprep.subr.bf16.mxu1 %v862_v0  ;;  %v624_v3 = vld [vmem:[#allocation5 + $0x8] sm:$0xff]   ;;  %v625_v4 = vld [vmem:[#allocation8 + $0x8] sm:$0xff]   ;;  %vm157_vm1 = vcmask 261120   ;;  %v504_v23 = vld [vmem:[#allocation7] ss:$0 sm:$0xff]  ;;  %s864_s7 = smov [#allocation16]  }
  0x94   :  { %557 = vmatprep.mubr.msk.bf16.mxu0 %vm863_vm0, %v862_v0  ;;  %565 = vmatprep.mubr.msk.bf16.mxu1 %vm863_vm0, %v862_v0  ;;  %v132_v5 = vld [vmem:[#allocation2] sm:$0xff]  ;;  %v626_v7 = vld [vmem:[#allocation13] sm:$0xff]   ;;  %v628_v9 = vld [vmem:[#allocation13 + $0x8] sm:$0xff]   ;;  %s491_s27 = sshll.u32 %s864_s7, 4  ;;  %s492_s27 = int_to_ptr.vmem [resolvable:$true] %s491_s27 }
  0x95   :  { %554 = vmatpush3.bf16.msra.mxu0 %v622_v1  ;;  %562 = vmatpush3.bf16.msra.mxu1 %v623_v2  ;;  %v138_v6 = vpack.c.bf16 %v132_v5, %v132_v5  ;;  %v627_v8 = vld [vmem:[#allocation11] sm:$0xff]   ;;  %v629_v10 = vld [vmem:[#allocation11 + $0x8] sm:$0xff]   ;;  %v630_v11 = vld [vmem:[#allocation13 + $0x10] sm:$0xff]   ;;  %s818_s22 = scalar_lea.vmem %s492_s27, 128  ;;  %p823_p9 = scmp.lt.s32.totalorder %s492_s27, %s492_s27 }
  0x96   :  { %555 = vmatprep.subr.bf16.mxu0 %v862_v0  ;;  %563 = vmatprep.subr.bf16.mxu1 %v862_v0  ;;  %v631_v12 = vld [vmem:[#allocation11 + $0x10] sm:$0xff]   ;;  %v632_v13 = vld [vmem:[#allocation13 + $0x18] sm:$0xff]   ;;  %v634_v15 = vld [vmem:[#allocation13 + $0x20] sm:$0xff]   ;;  %p819_p8 = scmp.ne.s32.totalorder %s492_s27, %s818_s22  ;;  %p824_p10 = scmp.lt.s32.totalorder %s818_s22, %s818_s22 }
  0x97   :  { %v633_v14 = vld [vmem:[#allocation11 + $0x18] sm:$0xff]   ;;  %v635_v16 = vld [vmem:[#allocation11 + $0x20] sm:$0xff]   ;;  %v636_v17 = vld [vmem:[#allocation13 + $0x28] sm:$0xff]  }
  0x98   :  { %v637_v18 = vld [vmem:[#allocation11 + $0x28] sm:$0xff]   ;;  %v638_v19 = vld [vmem:[#allocation13 + $0x30] sm:$0xff]   ;;  %v640_v21 = vld [vmem:[#allocation13 + $0x38] sm:$0xff]   ;;  %p825_p11 = por %p824_p10, %p823_p9 }
  0x99   :  { %556 = vmatpush3.bf16.msra.mxu0 %v624_v3  ;;  %564 = vmatpush3.bf16.msra.mxu1 %v625_v4  ;;  %v639_v20 = vld [vmem:[#allocation11 + $0x30] sm:$0xff]   ;;  %v641_v22 = vld [vmem:[#allocation11 + $0x38] sm:$0xff]   ;;  %v528_v41 = vld [vmem:[#allocation14] ss:$0 sm:$0xff] }
  0x9a   :  { %569 = vmatprep.subr.bf16.mxu0 %v862_v0  ;;  %589 = vmatprep.subr.bf16.mxu1 %v862_v0  ;;  %v508_v24 = vld [vmem:[#allocation10] ss:$0 sm:$0xff]  ;;  %p826_p12 = pnand %p825_p11, %p819_p8 }
  0x9c   :  { %558 = vmatmul.mubr.msk.bf16.vlgmr.msra.gmra.mrb[0].mxu0 %vm157_vm1, %v138_v6  ;;  %566 = vmatmul.mubr.msk.bf16.vlgmr.msra.gmra.mrb[0].mxu1 %vm157_vm1, %v138_v6 }
  0x9d   :  { %570 = vmatpush3.bf16.msra.mxu0 %v626_v7  ;;  %590 = vmatpush3.bf16.msra.mxu1 %v627_v8 }
  0x9e   :  { %571 = vmatprep.subr.bf16.mxu0 %v862_v0  ;;  %591 = vmatprep.subr.bf16.mxu1 %v862_v0 }
  0x9f   :  { %585 = vmatprep.mubr.msk.bf16.mxu0 %vm863_vm0, %v862_v0  ;;  %605 = vmatprep.mubr.msk.bf16.mxu1 %vm863_vm0, %v862_v0 }
  0xa1   :  { %572 = vmatpush3.bf16.msra.mxu0 %v628_v9  ;;  %592 = vmatpush3.bf16.msra.mxu1 %v629_v10 }
  0xa2   :  { %573 = vmatprep.subr.bf16.mxu0 %v862_v0  ;;  %593 = vmatprep.subr.bf16.mxu1 %v862_v0 }
  0xa5   :  { %574 = vmatpush3.bf16.msra.mxu0 %v630_v11  ;;  %594 = vmatpush3.bf16.msra.mxu1 %v631_v12 }
  0xa6   :  { %575 = vmatprep.subr.bf16.mxu0 %v862_v0  ;;  %595 = vmatprep.subr.bf16.mxu1 %v862_v0 }
  0xa9   :  { %576 = vmatpush3.bf16.msra.mxu0 %v632_v13  ;;  %596 = vmatpush3.bf16.msra.mxu1 %v633_v14 }
  0xaa   :  { %577 = vmatprep.subr.bf16.mxu0 %v862_v0  ;;  %597 = vmatprep.subr.bf16.mxu1 %v862_v0 }
  0xad   :  { %578 = vmatpush3.bf16.msra.mxu0 %v634_v15  ;;  %598 = vmatpush3.bf16.msra.mxu1 %v635_v16 }
  0xae   :  { %579 = vmatprep.subr.bf16.mxu0 %v862_v0  ;;  %599 = vmatprep.subr.bf16.mxu1 %v862_v0 }
  0xb1   :  { %580 = vmatpush3.bf16.msra.mxu0 %v636_v17  ;;  %600 = vmatpush3.bf16.msra.mxu1 %v637_v18 }
  0xb2   :  { %581 = vmatprep.subr.bf16.mxu0 %v862_v0  ;;  %601 = vmatprep.subr.bf16.mxu1 %v862_v0 }
  0xb5   :  { %582 = vmatpush3.bf16.msra.mxu0 %v638_v19  ;;  %602 = vmatpush3.bf16.msra.mxu1 %v639_v20 }
  0xb6   :  { %583 = vmatprep.subr.bf16.mxu0 %v862_v0  ;;  %603 = vmatprep.subr.bf16.mxu1 %v862_v0 }
  0xb9   :  { %584 = vmatpush3.bf16.msra.mxu0 %v640_v21  ;;  %604 = vmatpush3.bf16.msra.mxu1 %v641_v22 }
 0x16f   :  { %v195_v25 = vpop.f32.mrb[0].mxu0  ;;  %v259_v27 = vpop.f32.mrb[0].mxu1 }
 0x170   :  { %v196_v26 = vadd.f32 %v504_v23, %v195_v25  ;;  %v559_v28 = vpop.f32.mrb[1].mxu0  ;;  %v260_v29 = vadd.f32 %v508_v24, %v259_v27  ;;  %v567_v30 = vpop.f32.mrb[1].mxu1 }
 0x171   :  { %v198_v31 = vpop.f32.mrb[2].mxu0  ;;  %v262_v33 = vpop.f32.mrb[2].mxu1 }
 0x172   :  { %v201_v32 = vmax.f32 %v196_v26, 0.0  ;;  %v560_v34 = vpop.f32.mrb[3].mxu0  ;;  %v265_v35 = vmax.f32 %v260_v29, 0.0  ;;  %v568_v36 = vpop.f32.mrb[3].mxu1 }
 0x174   :  { %v266_v37 = vpack.c.bf16 %v201_v32, %v201_v32  ;;  %v283_v38 = vpack.c.bf16 %v265_v35, %v265_v35 }
 0x176   :  { %606 = vmatmul.mubr.bf16.vlgmr.msra.gmra.mrb[4].mxu1 %v266_v37  ;;  %586 = vmatmul.mubr.bf16.vlgmr.msra.gmra.mrb[4].mxu0 %v283_v38 }
 0x249   :  { %v470_v39 = vpop.f32.mrb[4].mxu1  ;;  %v382_v40 = vpop.f32.mrb[4].mxu0 }
 0x24a   :  { %v607_v42 = vpop.f32.mrb[5].mxu1  ;;  %v471_v43 = vadd.f32 %v470_v39, %v382_v40  ;;  %v587_v44 = vpop.f32.mrb[5].mxu0 }
 0x24b   :  { %v473_v45 = vpop.f32.mrb[6].mxu1  ;;  %v385_v46 = vpop.f32.mrb[6].mxu0 }
 0x24c   :  { %v608_v47 = vpop.f32.mrb[7].mxu1  ;;  %v483_v48 = vadd.f32 %v528_v41, %v471_v43  ;;  %v588_v49 = vpop.f32.mrb[7].mxu0 }
 0x24e   :  { %484 = vst [vmem:[#allocation16] sm:$0xff] %v483_v48 }
 0x24f   :  { %829 = shalt.err (!%p826_p12)
}
 0x250   :  { %s830_s10 = scalar_lea.hbm %s1066_s8, 128 }
 0x251   :  { %p831_p13 = scmp.ne.s32.totalorder %s1066_s8, %s830_s10  ;;  %p834_p0 = scmp.lt.u32.totalorder %s830_s10, %s1066_s8 }
 0x253   :  { %p836_p1 = pnand %p834_p0, %p831_p13 }
 0x255   :  { %839 = shalt.err (!%p836_p1)
}
 0x256   :  { %494 = dma.vmem_to_hbm [thread:$0]  %s492_s27, 128, %s1066_s8, [#allocation4]  }
 0x257   :  { %850 = dma.done.wait [#allocation4], 128  }
 0x258   :  { %851 = vsyncadd [#allocation4], 4294967168 }
 0x259   :  { %498 = vsyncpa [#allocation3], 1 }
 0x25a   :  { %499 = vsyncpa [#allocation6], 1 }
 0x25b   :  { %500 = vsyncpa [#allocation9], 1 }
 0x25c   :  { %501 = vsyncpa [#allocation12], 1 }
 0x25d   :  { %502 = vsyncpa [#allocation15], 1 }
 0x25e   :  { %503 = vsyncpa [#allocation4], 1 }

</bundles_post_ra>
